<compile_context>
chip_gen: v7x
topology: tpu7x:2x2x1
jax: 0.10.0
libtpu: 0.0.40
codegen_flags: <defaults>
</compile_context>

<pallas_src>
import math
from functools import lru_cache

import jax
import jax.numpy as jnp
from jax.experimental import pallas as pl
from jax.experimental.pallas import tpu as pltpu

_VMEM_LIMIT = 48 * 1024 * 1024      # < 64 MiB so it also fits v7x with headroom
_BN_EPS = 1e-5
_ACT_DTYPE = jnp.bfloat16           # activation storage dtype between layers


# ----------------------------------------------------------------------------
# Tile-size helpers
# ----------------------------------------------------------------------------
def _cpad(c):
    """Pad channel counts > 128 up to a multiple of 128 (728 -> 768)."""
    if c <= 128 or c % 128 == 0:
        return c
    return ((c + 127) // 128) * 128


def _choose_n_tile(n, target=512):
    """Largest multiple-of-128 divisor of n that is <= target, else full n."""
    best = None
    t = 128
    while t <= min(n, target):
        if n % t == 0:
            best = t
        t += 128
    return best if best is not None else n


def _choose_m_tile(m, target=512):
    """Largest multiple-of-8 divisor of m that is <= target, else full m."""
    if m <= target:
        return m
    for t in range(target, 7, -1):
        if m % t == 0 and t % 8 == 0:
            return t
    return m


# ----------------------------------------------------------------------------
# Pallas kernels (builders are lru_cached + jitted so each unique shape/config
# compiles exactly once)
# ----------------------------------------------------------------------------
@lru_cache(maxsize=None)
def _build_matmul_affine(M, K, N, has_res, relu):
    """out = relu?[ (x @ w) * scale + bias (+ residual) ] with x:(M,K), w:(K,N)."""
    tm = _choose_m_tile(M)
    tn = _choose_n_tile(N)
    gm, gn = M // tm, N // tn

    def kernel(*refs):
        if has_res:
            x_ref, w_ref, s_ref, b_ref, r_ref, o_ref = refs
        else:
            x_ref, w_ref, s_ref, b_ref, o_ref = refs
            r_ref = None
        acc = jnp.dot(x_ref[...].astype(jnp.bfloat16), w_ref[...],
                      preferred_element_type=jnp.float32)
        acc = acc * s_ref[...] + b_ref[...]
        if r_ref is not None:
            acc = acc + r_ref[...].astype(jnp.float32)
        if relu:
            acc = jnp.maximum(acc, 0.0)
        o_ref[...] = acc.astype(o_ref.dtype)

    in_specs = [
        pl.BlockSpec((tm, K), lambda n, m: (m, 0)),
        pl.BlockSpec((K, tn), lambda n, m: (0, n)),   # weight resident over inner m
        pl.BlockSpec((1, tn), lambda n, m: (0, n)),
        pl.BlockSpec((1, tn), lambda n, m: (0, n)),
    ]
    if has_res:
        in_specs.append(pl.BlockSpec((tm, tn), lambda n, m: (m, n)))

    fn = pl.pallas_call(
        kernel,
        out_shape=jax.ShapeDtypeStruct((M, N), _ACT_DTYPE),
        grid_spec=pltpu.PrefetchScalarGridSpec(
            num_scalar_prefetch=0,
            grid=(gn, gm),
            in_specs=in_specs,
            out_specs=pl.BlockSpec((tm, tn), lambda n, m: (m, n)),
        ),
        compiler_params=pltpu.CompilerParams(
            dimension_semantics=("parallel", "parallel"),
            vmem_limit_bytes=_VMEM_LIMIT),
    )
    return jax.jit(fn)


def _matmul_affine(x, w, scale, bias, residual=None, relu=False):
    M, K = x.shape
    N = w.shape[1]
    fn = _build_matmul_affine(M, K, N, residual is not None, relu)
    args = (x, w, scale, bias) + ((residual,) if residual is not None else ())
    return fn(*args)


def _make_fused_kernel(H, W, d, relu_in, relu_out, has_res):
    """Fused separable conv kernel body (stride 1)."""

    def kernel(*refs):
        if has_res:
            (x_ref, dw_ref, ds_ref, db_ref, pw_ref, ps_ref, pb_ref,
             r_ref, o_ref, dw_acc) = refs
        else:
            (x_ref, dw_ref, ds_ref, db_ref, pw_ref, ps_ref, pb_ref,
             o_ref, dw_acc) = refs
            r_ref = None

        # Depthwise 3x3 + BN, computed once per image; reused for every
        # output-channel tile of the inner grid axis.
        @pl.when(pl.program_id(1) == 0)
        def _():
            xv = x_ref[...].astype(jnp.float32)          # (1, Hp, Wp, Cin)
            if relu_in:
                xv = jnp.maximum(xv, 0.0)                # ReLU once, not per tap
            wv = dw_ref[...]                             # (9, 1, 1, Cin) f32
            acc = xv[:, 0:H, 0:W, :] * wv[0:1]
            for t in range(1, 9):
                i, j = divmod(t, 3)
                acc = acc + xv[:, i * d:i * d + H, j * d:j * d + W, :] * wv[t:t + 1]
            acc = acc * ds_ref[...] + db_ref[...]        # (1, H, W, Cin)
            for oh in range(H):                          # flatten into 2-D scratch
                dw_acc[oh * W:(oh + 1) * W, :] = acc[0, oh]

        # Pointwise 1x1 (+BN +residual +ReLU) for this output-channel tile.
        out = jnp.dot(dw_acc[...].astype(jnp.bfloat16), pw_ref[...],
                      preferred_element_type=jnp.float32)
        out = out * ps_ref[...] + pb_ref[...]
        if r_ref is not None:
            out = out + r_ref[0].astype(jnp.float32)
        if relu_out:
            out = jnp.maximum(out, 0.0)
        o_ref[0] = out.astype(o_ref.dtype)

    return kernel


@lru_cache(maxsize=None)
def _build_fused_sepconv(B, H, W, Cin, Cout, d, relu_in, relu_out, has_res):
    Hp, Wp = H + 2 * d, W + 2 * d
    M = H * W
    tn = _choose_n_tile(Cout)
    gn = Cout // tn
    kernel = _make_fused_kernel(H, W, d, relu_in, relu_out, has_res)

    in_specs = [
        pl.BlockSpec((1, Hp, Wp, Cin), lambda b, n: (b, 0, 0, 0)),   # padded image
        pl.BlockSpec((9, 1, 1, Cin), lambda b, n: (0, 0, 0, 0)),     # dw taps
        pl.BlockSpec((1, 1, 1, Cin), lambda b, n: (0, 0, 0, 0)),     # dw bn scale
        pl.BlockSpec((1, 1, 1, Cin), lambda b, n: (0, 0, 0, 0)),     # dw bn bias
        pl.BlockSpec((Cin, tn), lambda b, n: (0, n)),                # pw weight tile
        pl.BlockSpec((1, tn), lambda b, n: (0, n)),                  # pw bn scale
        pl.BlockSpec((1, tn), lambda b, n: (0, n)),                  # pw bn bias
    ]
    if has_res:
        in_specs.append(pl.BlockSpec((1, M, tn), lambda b, n: (b, 0, n)))

    fn = pl.pallas_call(
        kernel,
        out_shape=jax.ShapeDtypeStruct((B, M, Cout), _ACT_DTYPE),
        grid_spec=pltpu.PrefetchScalarGridSpec(
            num_scalar_prefetch=0,
            grid=(B, gn),
            in_specs=in_specs,
            out_specs=pl.BlockSpec((1, M, tn), lambda b, n: (b, 0, n)),
            scratch_shapes=[pltpu.VMEM((M, Cin), jnp.float32)],
        ),
        compiler_params=pltpu.CompilerParams(
            dimension_semantics=("parallel", "arbitrary"),
            vmem_limit_bytes=_VMEM_LIMIT),
    )
    return jax.jit(fn)


@lru_cache(maxsize=None)
def _build_depthwise(B, Hp, Wp, C, d, relu_in):
    """Standalone depthwise 3x3 (+BN, input ReLU once) — used by stride-2 seps."""
    H, W = Hp - 2 * d, Wp - 2 * d

    def kernel(x_ref, w_ref, s_ref, b_ref, o_ref):
        xv = x_ref[...].astype(jnp.float32)
        if relu_in:
            xv = jnp.maximum(xv, 0.0)
        wv = w_ref[...]
        acc = xv[:, 0:H, 0:W, :] * wv[0:1]
        for t in range(1, 9):
            i, j = divmod(t, 3)
            acc = acc + xv[:, i * d:i * d + H, j * d:j * d + W, :] * wv[t:t + 1]
        o_ref[...] = (acc * s_ref[...] + b_ref[...]).astype(o_ref.dtype)

    fn = pl.pallas_call(
        kernel,
        out_shape=jax.ShapeDtypeStruct((B, H, W, C), _ACT_DTYPE),
        grid_spec=pltpu.PrefetchScalarGridSpec(
            num_scalar_prefetch=0,
            grid=(B,),
            in_specs=[
                pl.BlockSpec((1, Hp, Wp, C), lambda b: (b, 0, 0, 0)),
                pl.BlockSpec((9, 1, 1, C), lambda b: (0, 0, 0, 0)),
                pl.BlockSpec((1, 1, 1, C), lambda b: (0, 0, 0, 0)),
                pl.BlockSpec((1, 1, 1, C), lambda b: (0, 0, 0, 0)),
            ],
            out_specs=pl.BlockSpec((1, H, W, C), lambda b: (b, 0, 0, 0)),
        ),
        compiler_params=pltpu.CompilerParams(
            dimension_semantics=("parallel",),
            vmem_limit_bytes=_VMEM_LIMIT),
    )
    return jax.jit(fn)


# ----------------------------------------------------------------------------
# JAX glue around the kernels
# ----------------------------------------------------------------------------
def _im2col_3x3(xp, ho, wo, stride):
    """padded NHWC -> (B*ho*wo, 9*C) patches (stem convs only)."""
    b, _, _, c = xp.shape
    cols = []
    for i in range(3):
        for j in range(3):
            sl = xp[:, i:i + stride * (ho - 1) + 1:stride,
                    j:j + stride * (wo - 1) + 1:stride, :]
            cols.append(sl)
    col = jnp.concatenate(cols, axis=-1)
    return col.reshape(b * ho * wo, 9 * c)


def conv3x3_bn(x, w_flat, scale, bias, stride, relu=False):
    """Standard 3x3 conv (padding=1) + BN (+ReLU) via im2col + tiled matmul."""
    # TODO(synk): accumulate the 9 taps inside the kernel for the two stem convs
    # instead of materializing the im2col patches in HBM.
    b, h, w, _ = x.shape
    ho = (h + 2 - 3) // stride + 1
    wo = (w + 2 - 3) // stride + 1
    xp = jnp.pad(x, ((0, 0), (1, 1), (1, 1), (0, 0)))
    cols = _im2col_3x3(xp, ho, wo, stride)
    y = _matmul_affine(cols, w_flat, scale, bias, relu=relu)
    return y.reshape(b, ho, wo, -1)


def conv1x1_bn(x, w, scale, bias, stride=1):
    """1x1 conv + BN (skip path) via tiled matmul."""
    if stride > 1:
        x = x[:, ::stride, ::stride, :]
    b, h, w_, c = x.shape
    y = _matmul_affine(x.reshape(b * h * w_, c), w, scale, bias)
    return y.reshape(b, h, w_, -1)


def _sepconv_fused(x, p, d, relu_in, pw_scale, pw_bias, residual, relu_out):
    B, H, W, Cin = x.shape
    Cout = p['pw'].shape[1]
    xp = jnp.pad(x, ((0, 0), (d, d), (d, d), (0, 0)))  # fixed_padding (kernel 3)
    args = [xp, p['dw'], p['dw_scale'], p['dw_bias'], p['pw'], pw_scale, pw_bias]
    has_res = residual is not None
    if has_res:
        args.append(residual.reshape(B, H * W, Cout))
    fn = _build_fused_sepconv(B, H, W, Cin, Cout, d, relu_in, relu_out, has_res)
    out = fn(*args)
    return out.reshape(B, H, W, Cout)


def separable_conv(x, sep, pw_scale, pw_bias, residual=None, relu_out=False):
    """relu_in -> fixed_padding -> depthwise(+BN) -> pointwise (+following BN,
    + optional residual, + optional final ReLU)."""
    p = sep['p']
    d = sep['dilation']
    if sep['stride'] == 1:
        return _sepconv_fused(x, p, d, sep['relu'], pw_scale, pw_bias,
                              residual, relu_out)
    # Stride-2 path (3 layers): stride-1 depthwise kernel + subsample + matmul.
    # TODO(synk): compute the strided depthwise directly in-kernel to avoid the
    # 4x extra depthwise work (strided sublane slicing).
    xp = jnp.pad(x, ((0, 0), (d, d), (d, d), (0, 0)))
    B, Hp, Wp, C = xp.shape
    y = _build_depthwise(B, Hp, Wp, C, d, sep['relu'])(
        xp, p['dw'], p['dw_scale'], p['dw_bias'])
    y = y[:, ::2, ::2, :]
    b, h, w_, c = y.shape
    res2 = residual.reshape(b * h * w_, -1) if residual is not None else None
    out = _matmul_affine(y.reshape(b * h * w_, c), p['pw'], pw_scale, pw_bias,
                         residual=res2, relu=relu_out)
    return out.reshape(b, h, w_, -1)


def block_forward(x, bp, relu_out=False):
    inp = x
    if bp['skip'] is not None:
        sk = conv1x1_bn(inp, bp['skip']['w'], *bp['skip']['bn'],
                        stride=bp['skip']['stride'])
    else:
        sk = inp
    seps = bp['seps']
    for idx, s in enumerate(seps):
        last = idx == len(seps) - 1
        ps, pb = s['bn']
        x = separable_conv(x, s, ps, pb,
                           residual=sk if last else None,
                           relu_out=(relu_out if last else False))
    return x


# ----------------------------------------------------------------------------
# Deterministic parameter initialization (mirrors AlignedXception._init_weight).
# 728-channel tensors are zero-padded to 768 for lane-dense kernels.
# ----------------------------------------------------------------------------
class KeyGen:
    def __init__(self, seed):
        self._key = jax.random.PRNGKey(seed)
        self._i = 0

    def next(self):
        self._i += 1
        return jax.random.fold_in(self._key, self._i)


def _normal(kg, shape, std):
    return jax.random.normal(kg.next(), shape, jnp.float32) * std


def init_bn(c):
    # eval-mode BN: gamma=1, beta=0, running_mean=0, running_var=1
    cp = _cpad(c)
    scale = jnp.full((1, cp), 1.0 / math.sqrt(1.0 + _BN_EPS), jnp.float32)
    bias = jnp.zeros((1, cp), jnp.float32)
    return scale, bias


def init_sepconv(kg, inplanes, planes):
    cin, cout = _cpad(inplanes), _cpad(planes)
    # depthwise 3x3 (groups=inplanes): n = 9 * inplanes
    dw = _normal(kg, (9, inplanes), math.sqrt(2.0 / (9.0 * inplanes)))
    dw = jnp.pad(dw, ((0, 0), (0, cin - inplanes))).reshape(9, 1, 1, cin)
    dw_scale = jnp.full((1, 1, 1, cin), 1.0 / math.sqrt(1.0 + _BN_EPS), jnp.float32)
    dw_bias = jnp.zeros((1, 1, 1, cin), jnp.float32)
    # pointwise 1x1: n = planes
    pw = _normal(kg, (inplanes, planes), math.sqrt(2.0 / planes))
    pw = jnp.pad(pw, ((0, cin - inplanes), (0, cout - planes))).astype(jnp.bfloat16)
    return dict(dw=dw, dw_scale=dw_scale, dw_bias=dw_bias, pw=pw)


def init_conv1x1(kg, inplanes, planes):
    cin, cout = _cpad(inplanes), _cpad(planes)
    w = _normal(kg, (inplanes, planes), math.sqrt(2.0 / planes))
    return jnp.pad(w, ((0, cin - inplanes), (0, cout - planes))).astype(jnp.bfloat16)


def init_conv3x3_dense(kg, in_c, out_c):
    w = _normal(kg, (9 * in_c, out_c), math.sqrt(2.0 / (9.0 * out_c)))
    return w.astype(jnp.bfloat16)


def init_block(kg, inplanes, planes, reps, stride=1, dilation=1,
               start_with_relu=True, grow_first=True, is_last=False):
    seps = []
    filters = inplanes
    if grow_first:
        seps.append(dict(p=init_sepconv(kg, inplanes, planes), relu=True,
                         stride=1, dilation=dilation, bn=init_bn(planes)))
        filters = planes
    for _ in range(reps - 1):
        seps.append(dict(p=init_sepconv(kg, filters, filters), relu=True,
                         stride=1, dilation=dilation, bn=init_bn(filters)))
    if not grow_first:
        seps.append(dict(p=init_sepconv(kg, inplanes, planes), relu=True,
                         stride=1, dilation=dilation, bn=init_bn(planes)))
    if stride != 1:
        seps.append(dict(p=init_sepconv(kg, planes, planes), relu=True,
                         stride=2, dilation=1, bn=init_bn(planes)))
    if stride == 1 and is_last:
        seps.append(dict(p=init_sepconv(kg, planes, planes), relu=True,
                         stride=1, dilation=1, bn=init_bn(planes)))
    if not start_with_relu:
        seps[0]['relu'] = False
    skip = None
    if planes != inplanes or stride != 1:
        skip = dict(w=init_conv1x1(kg, inplanes, planes), bn=init_bn(planes),
                    stride=stride)
    return dict(seps=seps, skip=skip)


def init_xception(kg, in_channels, output_stride=16):
    if output_stride == 16:
        entry3_stride, mid_dil, exit_dil = 2, 1, (1, 2)
    elif output_stride == 8:
        entry3_stride, mid_dil, exit_dil = 1, 2, (2, 4)
    else:
        raise NotImplementedError
    params = {}
    params['conv1'] = dict(w=init_conv3x3_dense(kg, in_channels, 32), bn=init_bn(32))
    params['conv2'] = dict(w=init_conv3x3_dense(kg, 32, 64), bn=init_bn(64))
    params['block1'] = init_block(kg, 64, 128, 2, stride=2, start_with_relu=False)
    params['block2'] = init_block(kg, 128, 256, 2, stride=2,
                                  start_with_relu=False, grow_first=True)
    params['block3'] = init_block(kg, 256, 728, 2, stride=entry3_stride,
                                  start_with_relu=True, grow_first=True,
                                  is_last=True)
    for i in range(4, 20):
        params[f'block{i}'] = init_block(kg, 728, 728, 3, stride=1,
                                         dilation=mid_dil)
    params['block20'] = init_block(kg, 728, 1024, 2, stride=1,
                                   dilation=exit_dil[0], start_with_relu=True,
                                   grow_first=False, is_last=True)
    params['conv3'] = dict(p=init_sepconv(kg, 1024, 1536), relu=True, stride=1,
                           dilation=exit_dil[1], bn=init_bn(1536))
    params['conv4'] = dict(p=init_sepconv(kg, 1536, 1536), relu=True, stride=1,
                           dilation=exit_dil[1], bn=init_bn(1536))
    params['conv5'] = dict(p=init_sepconv(kg, 1536, 2048), relu=True, stride=1,
                           dilation=exit_dil[1], bn=init_bn(2048))
    return params


# ----------------------------------------------------------------------------
# Forward pass (matches AlignedXception.forward, returns 7 feature maps, NCHW)
# ----------------------------------------------------------------------------
def xception_forward(x_nchw, params):
    x = jnp.transpose(x_nchw, (0, 2, 3, 1)).astype(_ACT_DTYPE)   # -> NHWC bf16
    feats = []
    x = conv3x3_bn(x, params['conv1']['w'], *params['conv1']['bn'],
                   stride=2, relu=True)
    feats.append(x)
    x = conv3x3_bn(x, params['conv2']['w'], *params['conv2']['bn'],
                   stride=1, relu=True)
    feats.append(x)
    # block1 (external relu after block1 fused into its last kernel)
    x = block_forward(x, params['block1'], relu_out=True)
    x = block_forward(x, params['block2'])
    feats.append(x)
    x = block_forward(x, params['block3'])
    for i in range(4, 9):
        x = block_forward(x, params[f'block{i}'])
    feats.append(x[..., :728])       # drop lane-padding channels (768 -> 728)
    for i in range(9, 14):
        x = block_forward(x, params[f'block{i}'])
    feats.append(x[..., :728])
    for i in range(14, 20):
        x = block_forward(x, params[f'block{i}'])
    x = block_forward(x, params['block20'])
    feats.append(x)
    # exit flow: relu -> conv3 -> bn3 -> relu -> conv4 -> bn4 -> relu -> conv5
    # -> bn5 -> relu (leading relus fused as depthwise input-ReLU, final relu
    # fused as conv5's pointwise output-ReLU)
    for name, final in (('conv3', False), ('conv4', False), ('conv5', True)):
        c = params[name]
        ps, pb = c['bn']
        x = separable_conv(x, c, ps, pb, relu_out=final)
    feats.append(x)
    # back to NCHW f32 to match PyTorch output convention
    return [jnp.transpose(f, (0, 3, 1, 2)).astype(jnp.float32) for f in feats]


if __name__ == "__main__":
    B, C_IN, H, W = 2, 3, 32, 32
    key = jax.random.PRNGKey(0)
    x = jax.random.normal(key, (B, C_IN, H, W), jnp.float32)

    kg = KeyGen(0)
    params = init_xception(kg, in_channels=C_IN, output_stride=16)

    feats = xception_forward(x, params)
    feats = jax.block_until_ready(feats)

    # light sanity check on shapes (output_stride=16 on 32x32 input)
    assert feats[0].shape == (B, 32, 16, 16)
    assert feats[1].shape == (B, 64, 16, 16)
    assert feats[2].shape == (B, 256, 4, 4)
    assert feats[3].shape == (B, 728, 2, 2)
    assert feats[4].shape == (B, 728, 2, 2)
    assert feats[5].shape == (B, 1024, 2, 2)
    assert feats[6].shape == (B, 2048, 2, 2)
    assert all(bool(jnp.all(jnp.isfinite(f))) for f in feats)

    print("KERNEL_OK")
</pallas_src>

<mosaic_0001>
module attributes {stable_mosaic.version = 11 : i64} {
  func.func @kernel(%arg0: i32, %arg1: i32, %arg2: memref<512x27xbf16, #tpu.memory_space<vmem>>, %arg3: memref<27x32xbf16, #tpu.memory_space<vmem>>, %arg4: memref<1x32xf32, #tpu.memory_space<vmem>>, %arg5: memref<1x32xf32, #tpu.memory_space<vmem>>, %arg6: memref<512x32xbf16, #tpu.memory_space<vmem>>) attributes {dimension_semantics = [#tpu.dimension_semantics<parallel>, #tpu.dimension_semantics<parallel>], iteration_bounds = array<i64: 1, 1>, scalar_prefetch = 0 : i64, scratch_operands = 0 : i64, tpu.core_type = #tpu.core_type<tc>, window_params = [{transform_indices = @transform_0, window_bounds = array<i64: 512, 27>}, {transform_indices = @transform_1, window_bounds = array<i64: 27, 32>}, {transform_indices = @transform_2, window_bounds = array<i64: 1, 32>}, {transform_indices = @transform_3, window_bounds = array<i64: 1, 32>}, {transform_indices = @transform_4, window_bounds = array<i64: 512, 32>}]} {
    %c0 = arith.constant 0 : index
    %c0_0 = arith.constant 0 : index
    %0 = vector.load %arg2[%c0, %c0_0] : memref<512x27xbf16, #tpu.memory_space<vmem>>, vector<512x27xbf16>
    %c0_1 = arith.constant 0 : index
    %c0_2 = arith.constant 0 : index
    %1 = vector.load %arg3[%c0_1, %c0_2] : memref<27x32xbf16, #tpu.memory_space<vmem>>, vector<27x32xbf16>
    %cst = arith.constant dense<0.000000e+00> : vector<512x32xf32>
    %2 = tpu.matmul %0, %1, %cst {dimension_numbers = #tpu.dot_dimension_numbers<[1], [0], [0], [1], [0, 0, 1, 1], [], []>} : vector<512x27xbf16>, vector<27x32xbf16>, vector<512x32xf32> -> vector<512x32xf32>
    %c0_3 = arith.constant 0 : index
    %c0_4 = arith.constant 0 : index
    %3 = vector.load %arg4[%c0_3, %c0_4] : memref<1x32xf32, #tpu.memory_space<vmem>>, vector<1x32xf32>
    %4 = vector.broadcast %3 : vector<1x32xf32> to vector<512x32xf32>
    %5 = arith.mulf %2, %4 : vector<512x32xf32>
    %c0_5 = arith.constant 0 : index
    %c0_6 = arith.constant 0 : index
    %6 = vector.load %arg5[%c0_5, %c0_6] : memref<1x32xf32, #tpu.memory_space<vmem>>, vector<1x32xf32>
    %7 = vector.broadcast %6 : vector<1x32xf32> to vector<512x32xf32>
    %8 = arith.addf %5, %7 : vector<512x32xf32>
    %cst_7 = arith.constant 0.000000e+00 : f32
    %9 = vector.broadcast %cst_7 : f32 to vector<512x32xf32>
    %10 = arith.maximumf %8, %9 : vector<512x32xf32>
    %11 = arith.truncf %10 : vector<512x32xf32> to vector<512x32xbf16>
    %c0_8 = arith.constant 0 : index
    %c0_9 = arith.constant 0 : index
    %12 = vector.load %arg6[%c0_8, %c0_9] : memref<512x32xbf16, #tpu.memory_space<vmem>>, vector<512x32xbf16>
    tpu.vector_store %arg6[%c0_8, %c0_9], %11 {strides = array<i32>} : memref<512x32xbf16, #tpu.memory_space<vmem>>, vector<512x32xbf16>,
    return
  }
  func.func @transform_0(%arg0: i32, %arg1: i32) -> (i32, i32) {
    %c0_i32 = arith.constant 0 : i32
    %c0_i32_0 = arith.constant 0 : i32
    return %arg1, %c0_i32 : i32, i32
  }
  func.func @transform_1(%arg0: i32, %arg1: i32) -> (i32, i32) {
    %c0_i32 = arith.constant 0 : i32
    %c0_i32_0 = arith.constant 0 : i32
    return %c0_i32, %arg0 : i32, i32
  }
  func.func @transform_2(%arg0: i32, %arg1: i32) -> (i32, i32) {
    %c0_i32 = arith.constant 0 : i32
    %c0_i32_0 = arith.constant 0 : i32
    return %c0_i32, %arg0 : i32, i32
  }
  func.func @transform_3(%arg0: i32, %arg1: i32) -> (i32, i32) {
    %c0_i32 = arith.constant 0 : i32
    %c0_i32_0 = arith.constant 0 : i32
    return %c0_i32, %arg0 : i32, i32
  }
  func.func @transform_4(%arg0: i32, %arg1: i32) -> (i32, i32) {
    %c0_i32 = arith.constant 0 : i32
    return %arg1, %arg0 : i32, i32
  }
}

</mosaic_0001>

<bundles_post_ra>
// kernel: tpu_custom_call.1
= control target key start
LH: loop header
LB: loop body
LE: loop exit
PB: predicated region body
PF: predicated region fallthrough
CT: control target
= control target key end

     0   :  { %vm354_vm0 = vcmask 1044480   ;;  %vm355_vm1 = vcmask 1045504   ;;  %vm257_vm2 = vcmask 220160   ;;  %v1518_v1 = vmov 65535   ;;  %s2072_s1 = inlined_call_operand.vmem [shape: bf16[27,32], index: 1, kind: input, shape index: {}]   ;;  %s2073_s0 = inlined_call_operand.vmem [shape: bf16[512,27], index: 0, kind: input, shape index: {}]   ;;  %s2074_s2 = inlined_call_operand.vmem [shape: f32[1,32], index: 2, kind: input, shape index: {}]   ;;  %s2075_s3 = inlined_call_operand.vmem [shape: f32[1,32], index: 3, kind: input, shape index: {}]   ;;  %s2076_s4 = inlined_call_operand.vmem [shape: bf16[512,32], index: 4, kind: output, shape index: {}]  }
   0x1   :  { %v1484_v0 = vld [vmem:[%s2072_s1] sm:$0xff]   ;;  %v356_v2 = vsel %vm354_vm0, 4294967295, %v1518_v1  ;;  %v1485_v3 = vld [vmem:[%s2072_s1 + $0x8] sm:$0x3f]   ;;  %v1490_v10 = vld [vmem:[%s2073_s0 + $0x10] sm:$0xff]   ;;  %vm1112_vm3 = vcmask 257024  }
   0x2   :  { %1411 = vmatprep.subr.bf16.mxu0 %v1484_v0  ;;  %1479 = vmatprep.subr.bf16.mxu1 %v1484_v0  ;;  %v357_v4 = vsel %vm355_vm1, %v356_v2, 0  ;;  %v1486_v5 = vld [vmem:[%s2073_s0] sm:$0xff]   ;;  %v1488_v8 = vld [vmem:[%s2073_s0 + $0x8] sm:$0xff]   ;;  %v1491_v11 = vld [vmem:[%s2073_s0 + $0x90] sm:$0xff]  }
   0x3   :  { %1412 = vmatpush3.bf16.msra.mxu0 %v1484_v0  ;;  %1481 = vmatpush3.bf16.msra.mxu1 %v1484_v0  ;;  %v359_v6 = vand.u32 %v1485_v3, %v357_v4  ;;  %v1487_v7 = vld [vmem:[%s2073_s0 + $0x80] sm:$0xff]   ;;  %v1489_v9 = vld [vmem:[%s2073_s0 + $0x88] sm:$0xff]   ;;  %v1492_v12 = vld [vmem:[%s2073_s0 + $0x18] sm:$0xff]  }
   0x4   :  { %1415 = vmatprep.mubr.msk.bf16.mxu0 %vm257_vm2, %v1486_v5  ;;  %1447 = vmatprep.mubr.msk.bf16.mxu1 %vm257_vm2, %v1487_v7  ;;  %v1493_v13 = vld [vmem:[%s2073_s0 + $0x98] sm:$0xff]   ;;  %v1494_v14 = vld [vmem:[%s2073_s0 + $0x20] sm:$0xff]   ;;  %v1496_v16 = vld [vmem:[%s2073_s0 + $0x28] sm:$0xff]  }
   0x5   :  { %1413 = vmatprep.subr.bf16.mxu0 %v359_v6  ;;  %1480 = vmatprep.subr.bf16.mxu1 %v359_v6  ;;  %v1495_v15 = vld [vmem:[%s2073_s0 + $0xa0] sm:$0xff]   ;;  %v1497_v17 = vld [vmem:[%s2073_s0 + $0xa8] sm:$0xff]   ;;  %v1498_v18 = vld [vmem:[%s2073_s0 + $0x30] sm:$0xff]  }
   0x6   :  { %v1499_v19 = vld [vmem:[%s2073_s0 + $0xb0] sm:$0xff]   ;;  %v1500_v20 = vld [vmem:[%s2073_s0 + $0x38] sm:$0xff]   ;;  %v1502_v22 = vld [vmem:[%s2073_s0 + $0x40] sm:$0xff]  }
   0x7   :  { %1414 = vmatpush3.bf16.msra.mxu0 %v359_v6  ;;  %1482 = vmatpush3.bf16.msra.mxu1 %v359_v6  ;;  %v1501_v21 = vld [vmem:[%s2073_s0 + $0xb8] sm:$0xff]   ;;  %v1503_v23 = vld [vmem:[%s2073_s0 + $0xc0] sm:$0xff]   ;;  %v1504_v24 = vld [vmem:[%s2073_s0 + $0x48] sm:$0xff]  }
   0x8   :  { %v1505_v25 = vld [vmem:[%s2073_s0 + $0xc8] sm:$0xff]   ;;  %v1506_v26 = vld [vmem:[%s2073_s0 + $0x50] sm:$0xff]   ;;  %v1508_v28 = vld [vmem:[%s2073_s0 + $0x58] sm:$0xff]  }
   0x9   :  { %v1507_v27 = vld [vmem:[%s2073_s0 + $0xd0] sm:$0xff]   ;;  %v1509_v29 = vld [vmem:[%s2073_s0 + $0xd8] sm:$0xff]   ;;  %v1510_v30 = vld [vmem:[%s2073_s0 + $0x60] sm:$0xff]  }
   0xa   :  { %1416 = vmatmul.mubr.msk.bf16.vlgmr.msra.gmra.mrb[0].mxu0 %vm257_vm2, %v1488_v8  ;;  %1448 = vmatmul.mubr.msk.bf16.vlgmr.msra.gmra.mrb[0].mxu1 %vm257_vm2, %v1489_v9  ;;  %v1511_v31 = vld [vmem:[%s2073_s0 + $0xe0] sm:$0xff]   ;;  %v1512_v32 = vld [vmem:[%s2073_s0 + $0x68] sm:$0xff]   ;;  %v1514_v34 = vld [vmem:[%s2073_s0 + $0x70] sm:$0xff]  }
   0xb   :  { %1419 = vmatprep.mubr.msk.bf16.mxu0 %vm257_vm2, %v1490_v10  ;;  %1451 = vmatprep.mubr.msk.bf16.mxu1 %vm257_vm2, %v1491_v11  ;;  %v1513_v33 = vld [vmem:[%s2073_s0 + $0xe8] sm:$0xff]   ;;  %v1515_v35 = vld [vmem:[%s2073_s0 + $0xf0] sm:$0xff]   ;;  %v1516_v36 = vld [vmem:[%s2073_s0 + $0x78] sm:$0xff]  }
   0xc   :  { %v1517_v37 = vld [vmem:[%s2073_s0 + $0xf8] sm:$0xff]   ;;  %v1681_v38 = vld [vmem:[%s2074_s2] ss:$0 sm:$0xff] }
   0xd   :  { %v1686_v40 = vld [vmem:[%s2075_s3] ss:$0 sm:$0xff] }
  0x12   :  { %1420 = vmatmul.mubr.msk.bf16.gmra.mrb[4].mxu0 %vm257_vm2, %v1492_v12  ;;  %1452 = vmatmul.mubr.msk.bf16.gmra.mrb[4].mxu1 %vm257_vm2, %v1493_v13 }
  0x13   :  { %1423 = vmatprep.mubr.msk.bf16.mxu0 %vm257_vm2, %v1494_v14  ;;  %1455 = vmatprep.mubr.msk.bf16.mxu1 %vm257_vm2, %v1495_v15 }
  0x1a   :  { %1424 = vmatmul.mubr.msk.bf16.gmra.mrb[8].mxu0 %vm257_vm2, %v1496_v16  ;;  %1456 = vmatmul.mubr.msk.bf16.gmra.mrb[8].mxu1 %vm257_vm2, %v1497_v17 }
  0x1b   :  { %1427 = vmatprep.mubr.msk.bf16.mxu0 %vm257_vm2, %v1498_v18  ;;  %1459 = vmatprep.mubr.msk.bf16.mxu1 %vm257_vm2, %v1499_v19 }
  0x22   :  { %1428 = vmatmul.mubr.msk.bf16.gmra.mrb[12].mxu0 %vm257_vm2, %v1500_v20  ;;  %1460 = vmatmul.mubr.msk.bf16.gmra.mrb[12].mxu1 %vm257_vm2, %v1501_v21 }
  0x23   :  { %1431 = vmatprep.mubr.msk.bf16.mxu0 %vm257_vm2, %v1502_v22  ;;  %1463 = vmatprep.mubr.msk.bf16.mxu1 %vm257_vm2, %v1503_v23 }
  0x2a   :  { %1432 = vmatmul.mubr.msk.bf16.gmra.mrb[16].mxu0 %vm257_vm2, %v1504_v24  ;;  %1464 = vmatmul.mubr.msk.bf16.gmra.mrb[16].mxu1 %vm257_vm2, %v1505_v25 }
  0x2b   :  { %1435 = vmatprep.mubr.msk.bf16.mxu0 %vm257_vm2, %v1506_v26  ;;  %1467 = vmatprep.mubr.msk.bf16.mxu1 %vm257_vm2, %v1507_v27 }
  0x32   :  { %1436 = vmatmul.mubr.msk.bf16.gmra.mrb[20].mxu0 %vm257_vm2, %v1508_v28  ;;  %1468 = vmatmul.mubr.msk.bf16.gmra.mrb[20].mxu1 %vm257_vm2, %v1509_v29 }
  0x33   :  { %1439 = vmatprep.mubr.msk.bf16.mxu0 %vm257_vm2, %v1510_v30  ;;  %1471 = vmatprep.mubr.msk.bf16.mxu1 %vm257_vm2, %v1511_v31 }
  0x3a   :  { %1440 = vmatmul.mubr.msk.bf16.gmra.mrb[24].mxu0 %vm257_vm2, %v1512_v32  ;;  %1472 = vmatmul.mubr.msk.bf16.gmra.mrb[24].mxu1 %vm257_vm2, %v1513_v33 }
  0x3b   :  { %1443 = vmatprep.mubr.msk.bf16.mxu0 %vm257_vm2, %v1514_v34  ;;  %1475 = vmatprep.mubr.msk.bf16.mxu1 %vm257_vm2, %v1515_v35 }
  0x42   :  { %1444 = vmatmul.mubr.msk.bf16.gmra.mrb[28].mxu0 %vm257_vm2, %v1516_v36  ;;  %1476 = vmatmul.mubr.msk.bf16.gmra.mrb[28].mxu1 %vm257_vm2, %v1517_v37 }
  0xdd   :  { %v1417_v39 = vpop.f32.mrb[0].mxu0  ;;  %v1449_v41 = vpop.f32.mrb[0].mxu1 }
  0xde   :  { %v659_v42 = vmul.f32 %v1417_v39, %v1681_v38  ;;  %v691_v43 = vmul.f32 %v1449_v41, %v1681_v38  ;;  %v395_v44 = vpop.f32.mrb[1].mxu0  ;;  %v523_v45 = vpop.f32.mrb[1].mxu1 }
  0xdf   :  { %v657_v46 = vmul.f32 %v1681_v38, %v395_v44  ;;  %v689_v47 = vmul.f32 %v1681_v38, %v523_v45  ;;  %v1418_v48 = vpop.f32.mrb[2].mxu0  ;;  %v1450_v49 = vpop.f32.mrb[2].mxu1 }
  0xe0   :  { %v730_v50 = vadd.f32 %v1686_v40, %v659_v42  ;;  %v762_v51 = vadd.f32 %v1686_v40, %v691_v43  ;;  %v660_v52 = vmul.f32 %v1418_v48, %v1681_v38  ;;  %v692_v53 = vmul.f32 %v1450_v49, %v1681_v38  ;;  %v398_v54 = vpop.f32.mrb[3].mxu0  ;;  %v526_v55 = vpop.f32.mrb[3].mxu1 }
  0xe1   :  { %v728_v56 = vadd.f32 %v1686_v40, %v657_v46  ;;  %v760_v57 = vadd.f32 %v1686_v40, %v689_v47  ;;  %v658_v58 = vmul.f32 %v1681_v38, %v398_v54  ;;  %v690_v59 = vmul.f32 %v1681_v38, %v526_v55 }
  0xe2   :  { %v794_v60 = vmax.f32 %v730_v50, 0.0  ;;  %v826_v61 = vmax.f32 %v762_v51, 0.0  ;;  %v731_v62 = vadd.f32 %v1686_v40, %v660_v52  ;;  %v763_v63 = vadd.f32 %v1686_v40, %v692_v53 }
  0xe3   :  { %v792_v0 = vmax.f32 %v728_v56, 0.0  ;;  %v824_v1 = vmax.f32 %v760_v57, 0.0  ;;  %v729_v2 = vadd.f32 %v1686_v40, %v658_v58  ;;  %v761_v3 = vadd.f32 %v1686_v40, %v690_v59 }
  0xe4   :  { %v1315_v4 = vpack.c.bf16 %v794_v60, %v794_v60  ;;  %v1347_v5 = vpack.c.bf16 %v826_v61, %v826_v61  ;;  %v795_v6 = vmax.f32 %v731_v62, 0.0  ;;  %v827_v7 = vmax.f32 %v763_v63, 0.0 }
  0xe5   :  { %v1313_v8 = vpack.c.bf16 %v792_v0, %v792_v0  ;;  %v1345_v9 = vpack.c.bf16 %v824_v1, %v824_v1  ;;  %v793_v10 = vmax.f32 %v729_v2, 0.0  ;;  %v825_v11 = vmax.f32 %v761_v3, 0.0  ;;  %v1421_v12 = vpop.f32.mrb[4].mxu0  ;;  %v1453_v13 = vpop.f32.mrb[4].mxu1 }
  0xe6   :  { %1115 = vst.msk [vmem:[%s2076_s4 + $0x8] sm:$0xf] %vm1112_vm3, %v1315_v4  ;;  %1147 = vst.msk [vmem:[%s2076_s4 + $0x88] sm:$0xf] %vm1112_vm3, %v1347_v5  ;;  %v1316_v14 = vpack.c.bf16 %v795_v6, %v795_v6  ;;  %v1348_v15 = vpack.c.bf16 %v827_v7, %v827_v7  ;;  %v663_v16 = vmul.f32 %v1421_v12, %v1681_v38  ;;  %v411_v18 = vpop.f32.mrb[5].mxu0  ;;  %v539_v19 = vpop.f32.mrb[5].mxu1 }
  0xe7   :  { %v695_v17 = vmul.f32 %v1453_v13, %v1681_v38  ;;  %1113 = vst.msk [vmem:[%s2076_s4] sm:$0xf] %vm1112_vm3, %v1313_v8  ;;  %1145 = vst.msk [vmem:[%s2076_s4 + $0x80] sm:$0xf] %vm1112_vm3, %v1345_v9  ;;  %v1314_v20 = vpack.c.bf16 %v793_v10, %v793_v10  ;;  %v1346_v21 = vpack.c.bf16 %v825_v11, %v825_v11  ;;  %v1422_v24 = vpop.f32.mrb[6].mxu0  ;;  %v1454_v25 = vpop.f32.mrb[6].mxu1 }
  0xe8   :  { %v661_v22 = vmul.f32 %v1681_v38, %v411_v18  ;;  %v693_v23 = vmul.f32 %v1681_v38, %v539_v19  ;;  %1116 = vst.msk [vmem:[%s2076_s4 + $0xc] sm:$0xf] %vm1112_vm3, %v1316_v14  ;;  %1148 = vst.msk [vmem:[%s2076_s4 + $0x8c] sm:$0xf] %vm1112_vm3, %v1348_v15  ;;  %v734_v26 = vadd.f32 %v1686_v40, %v663_v16  ;;  %v414_v30 = vpop.f32.mrb[7].mxu0  ;;  %v542_v31 = vpop.f32.mrb[7].mxu1 }
  0xe9   :  { %v766_v27 = vadd.f32 %v1686_v40, %v695_v17  ;;  %v664_v28 = vmul.f32 %v1422_v24, %v1681_v38  ;;  %v696_v29 = vmul.f32 %v1454_v25, %v1681_v38  ;;  %1114 = vst.msk [vmem:[%s2076_s4 + $0x4] sm:$0xf] %vm1112_vm3, %v1314_v20  ;;  %1146 = vst.msk [vmem:[%s2076_s4 + $0x84] sm:$0xf] %vm1112_vm3, %v1346_v21 }
  0xea   :  { %v732_v32 = vadd.f32 %v1686_v40, %v661_v22  ;;  %v764_v33 = vadd.f32 %v1686_v40, %v693_v23  ;;  %v662_v34 = vmul.f32 %v1681_v38, %v414_v30  ;;  %v694_v35 = vmul.f32 %v1681_v38, %v542_v31 }
  0xeb   :  { %v798_v36 = vmax.f32 %v734_v26, 0.0  ;;  %v830_v37 = vmax.f32 %v766_v27, 0.0  ;;  %v735_v39 = vadd.f32 %v1686_v40, %v664_v28  ;;  %v767_v41 = vadd.f32 %v1686_v40, %v696_v29 }
  0xec   :  { %v796_v42 = vmax.f32 %v732_v32, 0.0  ;;  %v828_v43 = vmax.f32 %v764_v33, 0.0  ;;  %v733_v44 = vadd.f32 %v1686_v40, %v662_v34  ;;  %v765_v45 = vadd.f32 %v1686_v40, %v694_v35 }
  0xed   :  { %v1319_v46 = vpack.c.bf16 %v798_v36, %v798_v36  ;;  %v1351_v47 = vpack.c.bf16 %v830_v37, %v830_v37  ;;  %v799_v48 = vmax.f32 %v735_v39, 0.0  ;;  %v831_v49 = vmax.f32 %v767_v41, 0.0  ;;  %v1425_v54 = vpop.f32.mrb[8].mxu0  ;;  %v1457_v55 = vpop.f32.mrb[8].mxu1 }
  0xee   :  { %v1317_v50 = vpack.c.bf16 %v796_v42, %v796_v42  ;;  %v1349_v51 = vpack.c.bf16 %v828_v43, %v828_v43  ;;  %v797_v52 = vmax.f32 %v733_v44, 0.0  ;;  %v829_v53 = vmax.f32 %v765_v45, 0.0  ;;  %v427_v60 = vpop.f32.mrb[9].mxu0  ;;  %v555_v61 = vpop.f32.mrb[9].mxu1 }
  0xef   :  { %1119 = vst.msk [vmem:[%s2076_s4 + $0x18] sm:$0xf] %vm1112_vm3, %v1319_v46  ;;  %1151 = vst.msk [vmem:[%s2076_s4 + $0x98] sm:$0xf] %vm1112_vm3, %v1351_v47  ;;  %v1320_v56 = vpack.c.bf16 %v799_v48, %v799_v48  ;;  %v1352_v57 = vpack.c.bf16 %v831_v49, %v831_v49  ;;  %v667_v58 = vmul.f32 %v1425_v54, %v1681_v38  ;;  %v1426_v2 = vpop.f32.mrb[10].mxu0  ;;  %v1458_v3 = vpop.f32.mrb[10].mxu1 }
  0xf0   :  { %v699_v59 = vmul.f32 %v1457_v55, %v1681_v38  ;;  %1117 = vst.msk [vmem:[%s2076_s4 + $0x10] sm:$0xf] %vm1112_vm3, %v1317_v50  ;;  %1149 = vst.msk [vmem:[%s2076_s4 + $0x90] sm:$0xf] %vm1112_vm3, %v1349_v51  ;;  %v1318_v62 = vpack.c.bf16 %v797_v52, %v797_v52  ;;  %v1350_v63 = vpack.c.bf16 %v829_v53, %v829_v53  ;;  %v430_v8 = vpop.f32.mrb[11].mxu0  ;;  %v558_v9 = vpop.f32.mrb[11].mxu1 }
  0xf1   :  { %v665_v0 = vmul.f32 %v1681_v38, %v427_v60  ;;  %v697_v1 = vmul.f32 %v1681_v38, %v555_v61  ;;  %1120 = vst.msk [vmem:[%s2076_s4 + $0x1c] sm:$0xf] %vm1112_vm3, %v1320_v56  ;;  %1152 = vst.msk [vmem:[%s2076_s4 + $0x9c] sm:$0xf] %vm1112_vm3, %v1352_v57  ;;  %v738_v4 = vadd.f32 %v1686_v40, %v667_v58 }
  0xf2   :  { %v770_v5 = vadd.f32 %v1686_v40, %v699_v59  ;;  %v668_v6 = vmul.f32 %v1426_v2, %v1681_v38  ;;  %v700_v7 = vmul.f32 %v1458_v3, %v1681_v38  ;;  %1118 = vst.msk [vmem:[%s2076_s4 + $0x14] sm:$0xf] %vm1112_vm3, %v1318_v62  ;;  %1150 = vst.msk [vmem:[%s2076_s4 + $0x94] sm:$0xf] %vm1112_vm3, %v1350_v63 }
  0xf3   :  { %v736_v10 = vadd.f32 %v1686_v40, %v665_v0  ;;  %v768_v11 = vadd.f32 %v1686_v40, %v697_v1  ;;  %v666_v12 = vmul.f32 %v1681_v38, %v430_v8  ;;  %v698_v13 = vmul.f32 %v1681_v38, %v558_v9 }
  0xf4   :  { %v802_v14 = vmax.f32 %v738_v4, 0.0  ;;  %v834_v15 = vmax.f32 %v770_v5, 0.0  ;;  %v739_v16 = vadd.f32 %v1686_v40, %v668_v6  ;;  %v771_v17 = vadd.f32 %v1686_v40, %v700_v7 }
  0xf5   :  { %v800_v18 = vmax.f32 %v736_v10, 0.0  ;;  %v832_v19 = vmax.f32 %v768_v11, 0.0  ;;  %v737_v20 = vadd.f32 %v1686_v40, %v666_v12  ;;  %v769_v21 = vadd.f32 %v1686_v40, %v698_v13  ;;  %v1429_v30 = vpop.f32.mrb[12].mxu0  ;;  %v1461_v31 = vpop.f32.mrb[12].mxu1 }
  0xf6   :  { %v1323_v22 = vpack.c.bf16 %v802_v14, %v802_v14  ;;  %v1355_v23 = vpack.c.bf16 %v834_v15, %v834_v15  ;;  %v803_v24 = vmax.f32 %v739_v16, 0.0  ;;  %v835_v25 = vmax.f32 %v771_v17, 0.0  ;;  %v443_v36 = vpop.f32.mrb[13].mxu0  ;;  %v571_v37 = vpop.f32.mrb[13].mxu1 }
  0xf7   :  { %v1321_v26 = vpack.c.bf16 %v800_v18, %v800_v18  ;;  %v1353_v27 = vpack.c.bf16 %v832_v19, %v832_v19  ;;  %v801_v28 = vmax.f32 %v737_v20, 0.0  ;;  %v833_v29 = vmax.f32 %v769_v21, 0.0  ;;  %v1430_v44 = vpop.f32.mrb[14].mxu0  ;;  %v1462_v45 = vpop.f32.mrb[14].mxu1 }
  0xf8   :  { %1123 = vst.msk [vmem:[%s2076_s4 + $0x28] sm:$0xf] %vm1112_vm3, %v1323_v22  ;;  %1155 = vst.msk [vmem:[%s2076_s4 + $0xa8] sm:$0xf] %vm1112_vm3, %v1355_v23  ;;  %v1324_v32 = vpack.c.bf16 %v803_v24, %v803_v24  ;;  %v1356_v33 = vpack.c.bf16 %v835_v25, %v835_v25  ;;  %v671_v34 = vmul.f32 %v1429_v30, %v1681_v38  ;;  %v446_v50 = vpop.f32.mrb[15].mxu0  ;;  %v574_v51 = vpop.f32.mrb[15].mxu1 }
  0xf9   :  { %v703_v35 = vmul.f32 %v1461_v31, %v1681_v38  ;;  %1121 = vst.msk [vmem:[%s2076_s4 + $0x20] sm:$0xf] %vm1112_vm3, %v1321_v26  ;;  %1153 = vst.msk [vmem:[%s2076_s4 + $0xa0] sm:$0xf] %vm1112_vm3, %v1353_v27  ;;  %v1322_v39 = vpack.c.bf16 %v801_v28, %v801_v28  ;;  %v1354_v41 = vpack.c.bf16 %v833_v29, %v833_v29 }
  0xfa   :  { %v669_v42 = vmul.f32 %v1681_v38, %v443_v36  ;;  %v701_v43 = vmul.f32 %v1681_v38, %v571_v37  ;;  %1124 = vst.msk [vmem:[%s2076_s4 + $0x2c] sm:$0xf] %vm1112_vm3, %v1324_v32  ;;  %1156 = vst.msk [vmem:[%s2076_s4 + $0xac] sm:$0xf] %vm1112_vm3, %v1356_v33  ;;  %v742_v46 = vadd.f32 %v1686_v40, %v671_v34 }
  0xfb   :  { %v774_v47 = vadd.f32 %v1686_v40, %v703_v35  ;;  %v672_v48 = vmul.f32 %v1430_v44, %v1681_v38  ;;  %v704_v49 = vmul.f32 %v1462_v45, %v1681_v38  ;;  %1122 = vst.msk [vmem:[%s2076_s4 + $0x24] sm:$0xf] %vm1112_vm3, %v1322_v39  ;;  %1154 = vst.msk [vmem:[%s2076_s4 + $0xa4] sm:$0xf] %vm1112_vm3, %v1354_v41 }
  0xfc   :  { %v740_v52 = vadd.f32 %v1686_v40, %v669_v42  ;;  %v772_v53 = vadd.f32 %v1686_v40, %v701_v43  ;;  %v670_v54 = vmul.f32 %v1681_v38, %v446_v50  ;;  %v702_v55 = vmul.f32 %v1681_v38, %v574_v51 }
  0xfd   :  { %v806_v56 = vmax.f32 %v742_v46, 0.0  ;;  %v838_v57 = vmax.f32 %v774_v47, 0.0  ;;  %v743_v58 = vadd.f32 %v1686_v40, %v672_v48  ;;  %v775_v59 = vadd.f32 %v1686_v40, %v704_v49  ;;  %v1433_v8 = vpop.f32.mrb[16].mxu0  ;;  %v1465_v9 = vpop.f32.mrb[16].mxu1 }
  0xfe   :  { %v804_v60 = vmax.f32 %v740_v52, 0.0  ;;  %v836_v61 = vmax.f32 %v772_v53, 0.0  ;;  %v741_v62 = vadd.f32 %v1686_v40, %v670_v54  ;;  %v773_v63 = vadd.f32 %v1686_v40, %v702_v55  ;;  %v459_v14 = vpop.f32.mrb[17].mxu0  ;;  %v587_v15 = vpop.f32.mrb[17].mxu1 }
  0xff   :  { %v1327_v0 = vpack.c.bf16 %v806_v56, %v806_v56  ;;  %v1359_v1 = vpack.c.bf16 %v838_v57, %v838_v57  ;;  %v807_v2 = vmax.f32 %v743_v58, 0.0  ;;  %v839_v3 = vmax.f32 %v775_v59, 0.0  ;;  %v1434_v20 = vpop.f32.mrb[18].mxu0  ;;  %v1466_v21 = vpop.f32.mrb[18].mxu1 }
 0x100   :  { %v1325_v4 = vpack.c.bf16 %v804_v60, %v804_v60  ;;  %v1357_v5 = vpack.c.bf16 %v836_v61, %v836_v61  ;;  %v805_v6 = vmax.f32 %v741_v62, 0.0  ;;  %v837_v7 = vmax.f32 %v773_v63, 0.0  ;;  %v462_v26 = vpop.f32.mrb[19].mxu0  ;;  %v590_v27 = vpop.f32.mrb[19].mxu1 }
 0x101   :  { %1127 = vst.msk [vmem:[%s2076_s4 + $0x38] sm:$0xf] %vm1112_vm3, %v1327_v0  ;;  %1159 = vst.msk [vmem:[%s2076_s4 + $0xb8] sm:$0xf] %vm1112_vm3, %v1359_v1  ;;  %v1328_v10 = vpack.c.bf16 %v807_v2, %v807_v2  ;;  %v1360_v11 = vpack.c.bf16 %v839_v3, %v839_v3  ;;  %v675_v12 = vmul.f32 %v1433_v8, %v1681_v38 }
 0x102   :  { %v707_v13 = vmul.f32 %v1465_v9, %v1681_v38  ;;  %1125 = vst.msk [vmem:[%s2076_s4 + $0x30] sm:$0xf] %vm1112_vm3, %v1325_v4  ;;  %1157 = vst.msk [vmem:[%s2076_s4 + $0xb0] sm:$0xf] %vm1112_vm3, %v1357_v5  ;;  %v1326_v16 = vpack.c.bf16 %v805_v6, %v805_v6  ;;  %v1358_v17 = vpack.c.bf16 %v837_v7, %v837_v7 }
 0x103   :  { %v673_v18 = vmul.f32 %v1681_v38, %v459_v14  ;;  %v705_v19 = vmul.f32 %v1681_v38, %v587_v15  ;;  %1128 = vst.msk [vmem:[%s2076_s4 + $0x3c] sm:$0xf] %vm1112_vm3, %v1328_v10  ;;  %1160 = vst.msk [vmem:[%s2076_s4 + $0xbc] sm:$0xf] %vm1112_vm3, %v1360_v11  ;;  %v746_v22 = vadd.f32 %v1686_v40, %v675_v12 }
 0x104   :  { %v778_v23 = vadd.f32 %v1686_v40, %v707_v13  ;;  %v676_v24 = vmul.f32 %v1434_v20, %v1681_v38  ;;  %v708_v25 = vmul.f32 %v1466_v21, %v1681_v38  ;;  %1126 = vst.msk [vmem:[%s2076_s4 + $0x34] sm:$0xf] %vm1112_vm3, %v1326_v16  ;;  %1158 = vst.msk [vmem:[%s2076_s4 + $0xb4] sm:$0xf] %vm1112_vm3, %v1358_v17 }
 0x105   :  { %v744_v28 = vadd.f32 %v1686_v40, %v673_v18  ;;  %v776_v29 = vadd.f32 %v1686_v40, %v705_v19  ;;  %v674_v30 = vmul.f32 %v1681_v38, %v462_v26  ;;  %v706_v31 = vmul.f32 %v1681_v38, %v590_v27  ;;  %v1437_v50 = vpop.f32.mrb[20].mxu0  ;;  %v1469_v51 = vpop.f32.mrb[20].mxu1 }
 0x106   :  { %v810_v32 = vmax.f32 %v746_v22, 0.0  ;;  %v842_v33 = vmax.f32 %v778_v23, 0.0  ;;  %v747_v34 = vadd.f32 %v1686_v40, %v676_v24  ;;  %v779_v35 = vadd.f32 %v1686_v40, %v708_v25  ;;  %v475_v56 = vpop.f32.mrb[21].mxu0  ;;  %v603_v57 = vpop.f32.mrb[21].mxu1 }
 0x107   :  { %v808_v36 = vmax.f32 %v744_v28, 0.0  ;;  %v840_v37 = vmax.f32 %v776_v29, 0.0  ;;  %v745_v39 = vadd.f32 %v1686_v40, %v674_v30  ;;  %v777_v41 = vadd.f32 %v1686_v40, %v706_v31  ;;  %v1438_v62 = vpop.f32.mrb[22].mxu0  ;;  %v1470_v63 = vpop.f32.mrb[22].mxu1 }
 0x108   :  { %v1331_v42 = vpack.c.bf16 %v810_v32, %v810_v32  ;;  %v1363_v43 = vpack.c.bf16 %v842_v33, %v842_v33  ;;  %v811_v44 = vmax.f32 %v747_v34, 0.0  ;;  %v843_v45 = vmax.f32 %v779_v35, 0.0  ;;  %v478_v4 = vpop.f32.mrb[23].mxu0  ;;  %v606_v5 = vpop.f32.mrb[23].mxu1 }
 0x109   :  { %v1329_v46 = vpack.c.bf16 %v808_v36, %v808_v36  ;;  %v1361_v47 = vpack.c.bf16 %v840_v37, %v840_v37  ;;  %v809_v48 = vmax.f32 %v745_v39, 0.0  ;;  %v841_v49 = vmax.f32 %v777_v41, 0.0 }
 0x10a   :  { %1131 = vst.msk [vmem:[%s2076_s4 + $0x48] sm:$0xf] %vm1112_vm3, %v1331_v42  ;;  %1163 = vst.msk [vmem:[%s2076_s4 + $0xc8] sm:$0xf] %vm1112_vm3, %v1363_v43  ;;  %v1332_v52 = vpack.c.bf16 %v811_v44, %v811_v44  ;;  %v1364_v53 = vpack.c.bf16 %v843_v45, %v843_v45  ;;  %v679_v54 = vmul.f32 %v1437_v50, %v1681_v38 }
 0x10b   :  { %v711_v55 = vmul.f32 %v1469_v51, %v1681_v38  ;;  %1129 = vst.msk [vmem:[%s2076_s4 + $0x40] sm:$0xf] %vm1112_vm3, %v1329_v46  ;;  %1161 = vst.msk [vmem:[%s2076_s4 + $0xc0] sm:$0xf] %vm1112_vm3, %v1361_v47  ;;  %v1330_v58 = vpack.c.bf16 %v809_v48, %v809_v48  ;;  %v1362_v59 = vpack.c.bf16 %v841_v49, %v841_v49 }
 0x10c   :  { %v677_v60 = vmul.f32 %v1681_v38, %v475_v56  ;;  %v709_v61 = vmul.f32 %v1681_v38, %v603_v57  ;;  %1132 = vst.msk [vmem:[%s2076_s4 + $0x4c] sm:$0xf] %vm1112_vm3, %v1332_v52  ;;  %1164 = vst.msk [vmem:[%s2076_s4 + $0xcc] sm:$0xf] %vm1112_vm3, %v1364_v53  ;;  %v750_v0 = vadd.f32 %v1686_v40, %v679_v54 }
 0x10d   :  { %v782_v1 = vadd.f32 %v1686_v40, %v711_v55  ;;  %v680_v2 = vmul.f32 %v1438_v62, %v1681_v38  ;;  %v712_v3 = vmul.f32 %v1470_v63, %v1681_v38  ;;  %1130 = vst.msk [vmem:[%s2076_s4 + $0x44] sm:$0xf] %vm1112_vm3, %v1330_v58  ;;  %1162 = vst.msk [vmem:[%s2076_s4 + $0xc4] sm:$0xf] %vm1112_vm3, %v1362_v59  ;;  %v1441_v26 = vpop.f32.mrb[24].mxu0  ;;  %v1473_v27 = vpop.f32.mrb[24].mxu1 }
 0x10e   :  { %v748_v6 = vadd.f32 %v1686_v40, %v677_v60  ;;  %v780_v7 = vadd.f32 %v1686_v40, %v709_v61  ;;  %v678_v8 = vmul.f32 %v1681_v38, %v478_v4  ;;  %v710_v9 = vmul.f32 %v1681_v38, %v606_v5  ;;  %v491_v32 = vpop.f32.mrb[25].mxu0  ;;  %v619_v33 = vpop.f32.mrb[25].mxu1 }
 0x10f   :  { %v814_v10 = vmax.f32 %v750_v0, 0.0  ;;  %v846_v11 = vmax.f32 %v782_v1, 0.0  ;;  %v751_v12 = vadd.f32 %v1686_v40, %v680_v2  ;;  %v783_v13 = vadd.f32 %v1686_v40, %v712_v3  ;;  %v1442_v39 = vpop.f32.mrb[26].mxu0  ;;  %v1474_v41 = vpop.f32.mrb[26].mxu1 }
 0x110   :  { %v812_v14 = vmax.f32 %v748_v6, 0.0  ;;  %v844_v15 = vmax.f32 %v780_v7, 0.0  ;;  %v749_v16 = vadd.f32 %v1686_v40, %v678_v8  ;;  %v781_v17 = vadd.f32 %v1686_v40, %v710_v9  ;;  %v494_v46 = vpop.f32.mrb[27].mxu0  ;;  %v622_v47 = vpop.f32.mrb[27].mxu1 }
 0x111   :  { %v1335_v18 = vpack.c.bf16 %v814_v10, %v814_v10  ;;  %v1367_v19 = vpack.c.bf16 %v846_v11, %v846_v11  ;;  %v815_v20 = vmax.f32 %v751_v12, 0.0  ;;  %v847_v21 = vmax.f32 %v783_v13, 0.0 }
 0x112   :  { %v1333_v22 = vpack.c.bf16 %v812_v14, %v812_v14  ;;  %v1365_v23 = vpack.c.bf16 %v844_v15, %v844_v15  ;;  %v813_v24 = vmax.f32 %v749_v16, 0.0  ;;  %v845_v25 = vmax.f32 %v781_v17, 0.0 }
 0x113   :  { %1135 = vst.msk [vmem:[%s2076_s4 + $0x58] sm:$0xf] %vm1112_vm3, %v1335_v18  ;;  %1167 = vst.msk [vmem:[%s2076_s4 + $0xd8] sm:$0xf] %vm1112_vm3, %v1367_v19  ;;  %v1336_v28 = vpack.c.bf16 %v815_v20, %v815_v20  ;;  %v1368_v29 = vpack.c.bf16 %v847_v21, %v847_v21  ;;  %v683_v30 = vmul.f32 %v1441_v26, %v1681_v38 }
 0x114   :  { %v715_v31 = vmul.f32 %v1473_v27, %v1681_v38  ;;  %1133 = vst.msk [vmem:[%s2076_s4 + $0x50] sm:$0xf] %vm1112_vm3, %v1333_v22  ;;  %1165 = vst.msk [vmem:[%s2076_s4 + $0xd0] sm:$0xf] %vm1112_vm3, %v1365_v23  ;;  %v1334_v34 = vpack.c.bf16 %v813_v24, %v813_v24  ;;  %v1366_v35 = vpack.c.bf16 %v845_v25, %v845_v25 }
 0x115   :  { %v681_v36 = vmul.f32 %v1681_v38, %v491_v32  ;;  %v713_v37 = vmul.f32 %v1681_v38, %v619_v33  ;;  %1136 = vst.msk [vmem:[%s2076_s4 + $0x5c] sm:$0xf] %vm1112_vm3, %v1336_v28  ;;  %1168 = vst.msk [vmem:[%s2076_s4 + $0xdc] sm:$0xf] %vm1112_vm3, %v1368_v29  ;;  %v754_v42 = vadd.f32 %v1686_v40, %v683_v30  ;;  %v1445_v4 = vpop.f32.mrb[28].mxu0  ;;  %v1477_v5 = vpop.f32.mrb[28].mxu1 }
 0x116   :  { %v786_v43 = vadd.f32 %v1686_v40, %v715_v31  ;;  %v684_v44 = vmul.f32 %v1442_v39, %v1681_v38  ;;  %v716_v45 = vmul.f32 %v1474_v41, %v1681_v38  ;;  %1134 = vst.msk [vmem:[%s2076_s4 + $0x54] sm:$0xf] %vm1112_vm3, %v1334_v34  ;;  %1166 = vst.msk [vmem:[%s2076_s4 + $0xd4] sm:$0xf] %vm1112_vm3, %v1366_v35  ;;  %v507_v10 = vpop.f32.mrb[29].mxu0  ;;  %v635_v11 = vpop.f32.mrb[29].mxu1 }
 0x117   :  { %v752_v48 = vadd.f32 %v1686_v40, %v681_v36  ;;  %v784_v49 = vadd.f32 %v1686_v40, %v713_v37  ;;  %v682_v50 = vmul.f32 %v1681_v38, %v494_v46  ;;  %v714_v51 = vmul.f32 %v1681_v38, %v622_v47  ;;  %v1446_v16 = vpop.f32.mrb[30].mxu0  ;;  %v1478_v17 = vpop.f32.mrb[30].mxu1 }
 0x118   :  { %v818_v52 = vmax.f32 %v754_v42, 0.0  ;;  %v850_v53 = vmax.f32 %v786_v43, 0.0  ;;  %v755_v54 = vadd.f32 %v1686_v40, %v684_v44  ;;  %v787_v55 = vadd.f32 %v1686_v40, %v716_v45  ;;  %v510_v22 = vpop.f32.mrb[31].mxu0  ;;  %v638_v23 = vpop.f32.mrb[31].mxu1 }
 0x119   :  { %v816_v56 = vmax.f32 %v752_v48, 0.0  ;;  %v848_v57 = vmax.f32 %v784_v49, 0.0  ;;  %v753_v58 = vadd.f32 %v1686_v40, %v682_v50  ;;  %v785_v59 = vadd.f32 %v1686_v40, %v714_v51 }
 0x11a   :  { %v1339_v60 = vpack.c.bf16 %v818_v52, %v818_v52  ;;  %v1371_v61 = vpack.c.bf16 %v850_v53, %v850_v53  ;;  %v819_v62 = vmax.f32 %v755_v54, 0.0  ;;  %v851_v63 = vmax.f32 %v787_v55, 0.0 }
 0x11b   :  { %v1337_v0 = vpack.c.bf16 %v816_v56, %v816_v56  ;;  %v1369_v1 = vpack.c.bf16 %v848_v57, %v848_v57  ;;  %v817_v2 = vmax.f32 %v753_v58, 0.0  ;;  %v849_v3 = vmax.f32 %v785_v59, 0.0 }
 0x11c   :  { %1139 = vst.msk [vmem:[%s2076_s4 + $0x68] sm:$0xf] %vm1112_vm3, %v1339_v60  ;;  %1171 = vst.msk [vmem:[%s2076_s4 + $0xe8] sm:$0xf] %vm1112_vm3, %v1371_v61  ;;  %v1340_v6 = vpack.c.bf16 %v819_v62, %v819_v62  ;;  %v1372_v7 = vpack.c.bf16 %v851_v63, %v851_v63  ;;  %v687_v8 = vmul.f32 %v1445_v4, %v1681_v38 }
 0x11d   :  { %v719_v9 = vmul.f32 %v1477_v5, %v1681_v38  ;;  %1137 = vst.msk [vmem:[%s2076_s4 + $0x60] sm:$0xf] %vm1112_vm3, %v1337_v0  ;;  %1169 = vst.msk [vmem:[%s2076_s4 + $0xe0] sm:$0xf] %vm1112_vm3, %v1369_v1  ;;  %v1338_v12 = vpack.c.bf16 %v817_v2, %v817_v2  ;;  %v1370_v13 = vpack.c.bf16 %v849_v3, %v849_v3 }
 0x11e   :  { %v685_v14 = vmul.f32 %v1681_v38, %v507_v10  ;;  %v717_v15 = vmul.f32 %v1681_v38, %v635_v11  ;;  %1140 = vst.msk [vmem:[%s2076_s4 + $0x6c] sm:$0xf] %vm1112_vm3, %v1340_v6  ;;  %1172 = vst.msk [vmem:[%s2076_s4 + $0xec] sm:$0xf] %vm1112_vm3, %v1372_v7  ;;  %v758_v18 = vadd.f32 %v1686_v40, %v687_v8 }
 0x11f   :  { %v790_v19 = vadd.f32 %v1686_v40, %v719_v9  ;;  %v688_v20 = vmul.f32 %v1446_v16, %v1681_v38  ;;  %v720_v21 = vmul.f32 %v1478_v17, %v1681_v38  ;;  %1138 = vst.msk [vmem:[%s2076_s4 + $0x64] sm:$0xf] %vm1112_vm3, %v1338_v12  ;;  %1170 = vst.msk [vmem:[%s2076_s4 + $0xe4] sm:$0xf] %vm1112_vm3, %v1370_v13 }
 0x120   :  { %v756_v24 = vadd.f32 %v1686_v40, %v685_v14  ;;  %v788_v25 = vadd.f32 %v1686_v40, %v717_v15  ;;  %v686_v26 = vmul.f32 %v1681_v38, %v510_v22  ;;  %v718_v27 = vmul.f32 %v1681_v38, %v638_v23 }
 0x121   :  { %v822_v28 = vmax.f32 %v758_v18, 0.0  ;;  %v854_v29 = vmax.f32 %v790_v19, 0.0  ;;  %v759_v30 = vadd.f32 %v1686_v40, %v688_v20  ;;  %v791_v31 = vadd.f32 %v1686_v40, %v720_v21 }
 0x122   :  { %v820_v32 = vmax.f32 %v756_v24, 0.0  ;;  %v852_v33 = vmax.f32 %v788_v25, 0.0  ;;  %v757_v34 = vadd.f32 %v1686_v40, %v686_v26  ;;  %v789_v35 = vadd.f32 %v1686_v40, %v718_v27 }
 0x123   :  { %v1343_v36 = vpack.c.bf16 %v822_v28, %v822_v28  ;;  %v1375_v37 = vpack.c.bf16 %v854_v29, %v854_v29  ;;  %v823_v39 = vmax.f32 %v759_v30, 0.0  ;;  %v855_v41 = vmax.f32 %v791_v31, 0.0 }
 0x124   :  { %v1341_v42 = vpack.c.bf16 %v820_v32, %v820_v32  ;;  %v1373_v43 = vpack.c.bf16 %v852_v33, %v852_v33  ;;  %v821_v44 = vmax.f32 %v757_v34, 0.0  ;;  %v853_v38 = vmax.f32 %v789_v35, 0.0 }
 0x125   :  { %1143 = vst.msk [vmem:[%s2076_s4 + $0x78] sm:$0xf] %vm1112_vm3, %v1343_v36  ;;  %1175 = vst.msk [vmem:[%s2076_s4 + $0xf8] sm:$0xf] %vm1112_vm3, %v1375_v37  ;;  %v1344_v45 = vpack.c.bf16 %v823_v39, %v823_v39  ;;  %v1376_v40 = vpack.c.bf16 %v855_v41, %v855_v41 }
 0x126   :  { %1141 = vst.msk [vmem:[%s2076_s4 + $0x70] sm:$0xf] %vm1112_vm3, %v1341_v42  ;;  %1173 = vst.msk [vmem:[%s2076_s4 + $0xf0] sm:$0xf] %vm1112_vm3, %v1373_v43  ;;  %v1342_v46 = vpack.c.bf16 %v821_v44, %v821_v44  ;;  %v1374_v47 = vpack.c.bf16 %v853_v38, %v853_v38 }
 0x127   :  { %1144 = vst.msk [vmem:[%s2076_s4 + $0x7c] sm:$0xf] %vm1112_vm3, %v1344_v45  ;;  %1176 = vst.msk [vmem:[%s2076_s4 + $0xfc] sm:$0xf] %vm1112_vm3, %v1376_v40 }
 0x128   :  { %1142 = vst.msk [vmem:[%s2076_s4 + $0x74] sm:$0xf] %vm1112_vm3, %v1342_v46  ;;  %1174 = vst.msk [vmem:[%s2076_s4 + $0xf4] sm:$0xf] %vm1112_vm3, %v1374_v47 }

</bundles_post_ra>
